<compile_context>
chip_gen: v5e
topology: v5e:2x2
jax: 0.10.0
libtpu: 0.0.40
codegen_flags: <defaults>
</compile_context>

<pallas_src>
import jax
import jax.numpy as jnp
import numpy as np
from jax import lax
from jax.experimental import pallas as pl
from jax.experimental.pallas import tpu as pltpu

EPS_IN = 1e-3   # InstanceNorm1d eps in OAFilter
EPS_BN = 1e-5   # BatchNorm1d default eps


def oafilter_kernel(x_ref, wc_ref, w2t_ref, pr_ref, pn_ref, o_ref):
    bt, C, N = x_ref.shape
    R = bt * C
    inv_n = jnp.float32(1.0 / N)
    bf16 = w2t_ref.dtype

    # (bt, C, N) -> (bt*C, N): free reshape (C == 8 fills the sublanes,
    # N stays on the lane axis so all stores are lane-dense / unmasked).
    x = x_ref[...].reshape(R, N)

    def channel_mix(w, z):
        # Dense per-batch (C, C) @ (C, N) dots instead of a block-diagonal
        # kron(I_bt, W): no zero-block MXU work, no (bt*C)^2 weight tile.
        # Row slices land on multiples of C (sublane-aligned for C % 8 == 0).
        zb = z.astype(bf16)
        return jnp.concatenate(
            [jnp.dot(w, zb[b * C:(b + 1) * C, :],
                     preferred_element_type=jnp.float32)
             for b in range(bt)],
            axis=0)

    # ---- conv1: InstanceNorm -> folded BN -> ReLU -> Conv1d(C->C) ----------
    s = jnp.sum(x, axis=1, keepdims=True)
    ss = jnp.sum(x * x, axis=1, keepdims=True)
    mu = s * inv_n
    var = jnp.maximum(ss * inv_n - mu * mu, 0.0)      # clamp cancellation
    y = (x - mu) * lax.rsqrt(var + EPS_IN)
    z = jnp.maximum(y * pr_ref[0] + pr_ref[1], 0.0)   # folded BN1 + ReLU
    a = channel_mix(wc_ref[0], z) + pr_ref[2]

    # ---- conv2 (point-mixing Conv1d on the transposed view, folded BN) -----
    t = jnp.maximum(a * pn_ref[0] + pn_ref[1], 0.0)   # folded BN2 + ReLU
    # W2 is pre-transposed on the host; bf16 operands, f32 accumulation.
    a2 = jnp.dot(t.astype(bf16), w2t_ref[...],
                 preferred_element_type=jnp.float32) + pn_ref[2]
    mid = a + a2                                      # out = out + conv2(out)

    # ---- conv3: InstanceNorm -> folded BN -> ReLU -> Conv1d(C->C) ----------
    s3 = jnp.sum(mid, axis=1, keepdims=True)
    ss3 = jnp.sum(mid * mid, axis=1, keepdims=True)
    mu3 = s3 * inv_n
    var3 = jnp.maximum(ss3 * inv_n - mu3 * mu3, 0.0)
    y3 = (mid - mu3) * lax.rsqrt(var3 + EPS_IN)
    z3 = jnp.maximum(y3 * pr_ref[3] + pr_ref[4], 0.0)
    out = channel_mix(wc_ref[1], z3) + pr_ref[5]

    # shot_cut is None (out_channels == channels) -> residual with raw input.
    o_ref[...] = (out + x).reshape(bt, C, N)


def _pick_batch_tile(B, C, N):
    """One grid step by default (v5e/v6e have a single TensorCore); split in
    two only on v7x and only when each step moves enough data (>= 2 MB) to
    amortize the ~0.35us per-step overhead."""
    try:
        kind = jax.devices()[0].device_kind.lower()
    except Exception:
        kind = ""
    if "v7" in kind and B % 2 == 0 and (B // 2) * C * N * 4 >= (2 << 20):
        return B // 2
    return B


def oafilter_pallas(x, params, *, batch_tile=None):
    B, C, N = x.shape
    bt = _pick_batch_tile(B, C, N) if batch_tile is None else batch_tile
    assert B % bt == 0
    R = bt * C
    num_steps = B // bt
    f32, bf16 = jnp.float32, jnp.bfloat16

    # Fold BatchNorm running stats + affine into scale/shift on the host.
    def fold(g, be, rm, rv):
        sc = g * lax.rsqrt(rv + EPS_BN)
        return sc, be - rm * sc

    s1, b1 = fold(params["g1"], params["be1"], params["rm1"], params["rv1"])
    s2, b2 = fold(params["g2"], params["be2"], params["rm2"], params["rv2"])
    s3, b3 = fold(params["g3"], params["be3"], params["rm3"], params["rv3"])

    def tile_rows(v):                         # (C,) -> (R, 1); row = b*C + c
        return jnp.tile(v.astype(f32), (bt,)).reshape(R, 1)

    # Packed per-row (channel) params: s1, b1, bi1, s3, b3, bi3 -> (6, R, 1)
    pr = jnp.stack([tile_rows(s1), tile_rows(b1), tile_rows(params["bi1"]),
                    tile_rows(s3), tile_rows(b3), tile_rows(params["bi3"])])
    # Packed per-point params: s2, b2, bi2 -> (3, 1, N)
    pn = jnp.stack([s2.reshape(1, N), b2.reshape(1, N),
                    params["bi2"].reshape(1, N)]).astype(f32)
    # Dense channel-mixing weights, bf16 for the MXU -> (2, C, C)
    wc = jnp.stack([params["w1"], params["w3"]]).astype(bf16)
    # Point-mixing weight, pre-transposed once on the host; bf16 for the MXU.
    # For production point counts, pad N to a multiple of 128 (e.g. 2000->2048)
    # before calling so stores stay unmasked and the MXU runs full-width.
    # TODO(synk): at production N (~2048) add a second grid axis that tiles the
    # conv2 OUTPUT-points dim and streams (N, tn) slices of w2t instead of
    # keeping the full (N, N) weight resident (matters on v7x's 64 MiB VMEM).
    w2t = params["w2"].T.astype(bf16)

    # Grid-invariant operands: single-buffer them when the grid actually has
    # more than one step (double-buffering constants only doubles VMEM).
    def const_spec(shape, index_map):
        if num_steps > 1:
            return pl.BlockSpec(shape, index_map,
                                pipeline_mode=pl.Buffered(1))
        return pl.BlockSpec(shape, index_map)

    in_specs = [
        pl.BlockSpec((bt, C, N), lambda i: (i, 0, 0)),
        const_spec(wc.shape, lambda i: (0, 0, 0)),
        const_spec(w2t.shape, lambda i: (0, 0)),
        const_spec(pr.shape, lambda i: (0, 0, 0)),
        const_spec(pn.shape, lambda i: (0, 0, 0)),
    ]

    # Explicit scoped-VMEM budget from actual operand footprints.
    act_bytes = bt * C * N * 4
    const_bytes = wc.size * 2 + w2t.size * 2 + pr.size * 4 + pn.size * 4
    vmem_bytes = 2 * 2 * act_bytes + 2 * const_bytes + (4 << 20)
    vmem_limit = int(min(max(vmem_bytes, 16 << 20), 64 << 20))

    return pl.pallas_call(
        oafilter_kernel,
        out_shape=jax.ShapeDtypeStruct((B, C, N), f32),
        grid_spec=pltpu.PrefetchScalarGridSpec(
            num_scalar_prefetch=0,
            grid=(num_steps,),
            in_specs=in_specs,
            out_specs=pl.BlockSpec((bt, C, N), lambda i: (i, 0, 0)),
        ),
        compiler_params=pltpu.CompilerParams(
            dimension_semantics=("parallel",),
            vmem_limit_bytes=vmem_limit),
    )(x.astype(f32), wc, w2t, pr, pn)


def oafilter_reference(x, P):
    """Pure-JAX reference, written to mirror the PyTorch module literally."""
    # conv1
    mu = x.mean(2, keepdims=True)
    var = ((x - mu) ** 2).mean(2, keepdims=True)
    y = (x - mu) / jnp.sqrt(var + EPS_IN)
    z = (y - P["rm1"][None, :, None]) / jnp.sqrt(P["rv1"][None, :, None] + EPS_BN) \
        * P["g1"][None, :, None] + P["be1"][None, :, None]
    z = jnp.maximum(z, 0.0)
    a = jnp.einsum("oc,bcn->bon", P["w1"], z) + P["bi1"][None, :, None]
    out = jnp.transpose(a, (0, 2, 1))  # (B, N, Cout)
    # conv2
    t = (out - P["rm2"][None, :, None]) / jnp.sqrt(P["rv2"][None, :, None] + EPS_BN) \
        * P["g2"][None, :, None] + P["be2"][None, :, None]
    t = jnp.maximum(t, 0.0)
    c2 = jnp.einsum("pq,bqc->bpc", P["w2"], t) + P["bi2"][None, :, None]
    out = out + c2
    # conv3
    u = jnp.transpose(out, (0, 2, 1))  # (B, Cout, N)
    mu3 = u.mean(2, keepdims=True)
    var3 = ((u - mu3) ** 2).mean(2, keepdims=True)
    y3 = (u - mu3) / jnp.sqrt(var3 + EPS_IN)
    z3 = (y3 - P["rm3"][None, :, None]) / jnp.sqrt(P["rv3"][None, :, None] + EPS_BN) \
        * P["g3"][None, :, None] + P["be3"][None, :, None]
    z3 = jnp.maximum(z3, 0.0)
    c3 = jnp.einsum("oc,bcn->bon", P["w3"], z3) + P["bi3"][None, :, None]
    return c3 + x


def make_params(key, channels, points):
    ks = jax.random.split(key, 20)
    f32 = jnp.float32
    P = {
        # conv1 block
        "rm1": jax.random.normal(ks[0], (channels,), f32) * 0.1,
        "rv1": jax.random.uniform(ks[1], (channels,), f32, 0.5, 1.5),
        "g1":  jax.random.uniform(ks[2], (channels,), f32, 0.5, 1.5),
        "be1": jax.random.normal(ks[3], (channels,), f32) * 0.1,
        "w1":  jax.random.normal(ks[4], (channels, channels), f32) * 0.1,
        "bi1": jax.random.normal(ks[5], (channels,), f32) * 0.1,
        # conv2 block (BN over `points`, Conv1d points->points)
        "rm2": jax.random.normal(ks[6], (points,), f32) * 0.1,
        "rv2": jax.random.uniform(ks[7], (points,), f32, 0.5, 1.5),
        "g2":  jax.random.uniform(ks[8], (points,), f32, 0.5, 1.5),
        "be2": jax.random.normal(ks[9], (points,), f32) * 0.1,
        "w2":  jax.random.normal(ks[10], (points, points), f32) * 0.05,
        "bi2": jax.random.normal(ks[11], (points,), f32) * 0.1,
        # conv3 block
        "rm3": jax.random.normal(ks[12], (channels,), f32) * 0.1,
        "rv3": jax.random.uniform(ks[13], (channels,), f32, 0.5, 1.5),
        "g3":  jax.random.uniform(ks[14], (channels,), f32, 0.5, 1.5),
        "be3": jax.random.normal(ks[15], (channels,), f32) * 0.1,
        "w3":  jax.random.normal(ks[16], (channels, channels), f32) * 0.1,
        "bi3": jax.random.normal(ks[17], (channels,), f32) * 0.1,
    }
    return P


if __name__ == "__main__":
    B, C, N = 4, 8, 128   # batch, channels, points

    key = jax.random.PRNGKey(0)
    kx, kp = jax.random.split(key)
    x = jax.random.normal(kx, (B, C, N), jnp.float32)
    params = make_params(kp, C, N)

    out = oafilter_pallas(x, params)
    out = jax.block_until_ready(out)

    ref = jax.block_until_ready(oafilter_reference(x, params))
    # bf16 matmul operands (f32 accumulation) -> inference-grade tolerance.
    np.testing.assert_allclose(np.asarray(out), np.asarray(ref),
                               rtol=3e-2, atol=3e-2)

    print("KERNEL_OK")
</pallas_src>

<mosaic_0001>
module attributes {stable_mosaic.version = 11 : i64} {
  func.func @oafilter_kernel(%arg0: i32, %arg1: memref<4x8x128xf32, #tpu.memory_space<vmem>>, %arg2: memref<2x8x8xbf16, #tpu.memory_space<vmem>>, %arg3: memref<128x128xbf16, #tpu.memory_space<vmem>>, %arg4: memref<6x32x1xf32, #tpu.memory_space<vmem>>, %arg5: memref<3x1x128xf32, #tpu.memory_space<vmem>>, %arg6: memref<4x8x128xf32, #tpu.memory_space<vmem>>) attributes {dimension_semantics = [#tpu.dimension_semantics<parallel>], iteration_bounds = array<i64: 1>, scalar_prefetch = 0 : i64, scratch_operands = 0 : i64, tpu.core_type = #tpu.core_type<tc>, window_params = [{transform_indices = @transform_0, window_bounds = array<i64: 4, 8, 128>}, {pipeline_mode = #tpu.pipeline_mode<synchronous>, transform_indices = @transform_1, window_bounds = array<i64: 2, 8, 8>}, {pipeline_mode = #tpu.pipeline_mode<synchronous>, transform_indices = @transform_2, window_bounds = array<i64: 128, 128>}, {pipeline_mode = #tpu.pipeline_mode<synchronous>, transform_indices = @transform_3, window_bounds = array<i64: 6, 32, 1>}, {pipeline_mode = #tpu.pipeline_mode<synchronous>, transform_indices = @transform_4, window_bounds = array<i64: 3, 1, 128>}, {transform_indices = @transform_5, window_bounds = array<i64: 4, 8, 128>}]} {
    %c0 = arith.constant 0 : index
    %c0_0 = arith.constant 0 : index
    %c0_1 = arith.constant 0 : index
    %0 = vector.load %arg1[%c0, %c0_0, %c0_1] : memref<4x8x128xf32, #tpu.memory_space<vmem>>, vector<4x8x128xf32>
    %1 = vector.shape_cast %0 : vector<4x8x128xf32> to vector<32x128xf32>
    %cst = arith.constant dense<0.000000e+00> : vector<32xf32>
    %2 = vector.multi_reduction <add>, %1, %cst [1] : vector<32x128xf32> to vector<32xf32>
    %3 = vector.shape_cast %2 : vector<32xf32> to vector<32x1xf32>
    %4 = arith.mulf %1, %1 : vector<32x128xf32>
    %cst_2 = arith.constant dense<0.000000e+00> : vector<32xf32>
    %5 = vector.multi_reduction <add>, %4, %cst_2 [1] : vector<32x128xf32> to vector<32xf32>
    %6 = vector.shape_cast %5 : vector<32xf32> to vector<32x1xf32>
    %cst_3 = arith.constant 7.812500e-03 : f32
    %7 = vector.broadcast %cst_3 : f32 to vector<32x1xf32>
    %8 = arith.mulf %3, %7 : vector<32x1xf32>
    %cst_4 = arith.constant 7.812500e-03 : f32
    %9 = vector.broadcast %cst_4 : f32 to vector<32x1xf32>
    %10 = arith.mulf %6, %9 : vector<32x1xf32>
    %11 = arith.mulf %8, %8 : vector<32x1xf32>
    %12 = arith.subf %10, %11 : vector<32x1xf32>
    %cst_5 = arith.constant 0.000000e+00 : f32
    %13 = vector.broadcast %cst_5 : f32 to vector<32x1xf32>
    %14 = arith.maximumf %12, %13 : vector<32x1xf32>
    %15 = vector.broadcast %8 : vector<32x1xf32> to vector<32x128xf32>
    %16 = arith.subf %1, %15 : vector<32x128xf32>
    %cst_6 = arith.constant 1.000000e-03 : f32
    %17 = vector.broadcast %cst_6 : f32 to vector<32x1xf32>
    %18 = arith.addf %14, %17 : vector<32x1xf32>
    %19 = math.rsqrt %18 : vector<32x1xf32>
    %20 = vector.broadcast %19 : vector<32x1xf32> to vector<32x128xf32>
    %21 = arith.mulf %16, %20 : vector<32x128xf32>
    %c0_7 = arith.constant 0 : index
    %c0_8 = arith.constant 0 : index
    %c0_9 = arith.constant 0 : index
    %22 = vector.load %arg4[%c0_7, %c0_8, %c0_9] : memref<6x32x1xf32, #tpu.memory_space<vmem>>, vector<1x32x1xf32>
    %23 = vector.shape_cast %22 : vector<1x32x1xf32> to vector<32x1xf32>
    %24 = vector.broadcast %23 : vector<32x1xf32> to vector<32x128xf32>
    %25 = arith.mulf %21, %24 : vector<32x128xf32>
    %c1 = arith.constant 1 : index
    %c0_10 = arith.constant 0 : index
    %c0_11 = arith.constant 0 : index
    %26 = vector.load %arg4[%c1, %c0_10, %c0_11] : memref<6x32x1xf32, #tpu.memory_space<vmem>>, vector<1x32x1xf32>
    %27 = vector.shape_cast %26 : vector<1x32x1xf32> to vector<32x1xf32>
    %28 = vector.broadcast %27 : vector<32x1xf32> to vector<32x128xf32>
    %29 = arith.addf %25, %28 : vector<32x128xf32>
    %cst_12 = arith.constant 0.000000e+00 : f32
    %30 = vector.broadcast %cst_12 : f32 to vector<32x128xf32>
    %31 = arith.maximumf %29, %30 : vector<32x128xf32>
    %c0_13 = arith.constant 0 : index
    %c0_14 = arith.constant 0 : index
    %c0_15 = arith.constant 0 : index
    %32 = vector.load %arg2[%c0_13, %c0_14, %c0_15] : memref<2x8x8xbf16, #tpu.memory_space<vmem>>, vector<1x8x8xbf16>
    %33 = vector.shape_cast %32 : vector<1x8x8xbf16> to vector<8x8xbf16>
    %34 = arith.truncf %31 : vector<32x128xf32> to vector<32x128xbf16>
    %35 = vector.extract_strided_slice %34 {offsets = [0, 0], sizes = [8, 128], strides = [1, 1]} : vector<32x128xbf16> to vector<8x128xbf16>
    %cst_16 = arith.constant dense<0.000000e+00> : vector<8x128xf32>
    %36 = tpu.matmul %33, %35, %cst_16 {dimension_numbers = #tpu.dot_dimension_numbers<[1], [0], [0], [1], [0, 0, 1, 1], [], []>} : vector<8x8xbf16>, vector<8x128xbf16>, vector<8x128xf32> -> vector<8x128xf32>
    %37 = vector.extract_strided_slice %34 {offsets = [8, 0], sizes = [8, 128], strides = [1, 1]} : vector<32x128xbf16> to vector<8x128xbf16>
    %cst_17 = arith.constant dense<0.000000e+00> : vector<8x128xf32>
    %38 = tpu.matmul %33, %37, %cst_17 {dimension_numbers = #tpu.dot_dimension_numbers<[1], [0], [0], [1], [0, 0, 1, 1], [], []>} : vector<8x8xbf16>, vector<8x128xbf16>, vector<8x128xf32> -> vector<8x128xf32>
    %39 = vector.extract_strided_slice %34 {offsets = [16, 0], sizes = [8, 128], strides = [1, 1]} : vector<32x128xbf16> to vector<8x128xbf16>
    %cst_18 = arith.constant dense<0.000000e+00> : vector<8x128xf32>
    %40 = tpu.matmul %33, %39, %cst_18 {dimension_numbers = #tpu.dot_dimension_numbers<[1], [0], [0], [1], [0, 0, 1, 1], [], []>} : vector<8x8xbf16>, vector<8x128xbf16>, vector<8x128xf32> -> vector<8x128xf32>
    %41 = vector.extract_strided_slice %34 {offsets = [24, 0], sizes = [8, 128], strides = [1, 1]} : vector<32x128xbf16> to vector<8x128xbf16>
    %cst_19 = arith.constant dense<0.000000e+00> : vector<8x128xf32>
    %42 = tpu.matmul %33, %41, %cst_19 {dimension_numbers = #tpu.dot_dimension_numbers<[1], [0], [0], [1], [0, 0, 1, 1], [], []>} : vector<8x8xbf16>, vector<8x128xbf16>, vector<8x128xf32> -> vector<8x128xf32>
    %43 = tpu.concatenate %36, %38, %40, %42 in 0 : vector<8x128xf32>, vector<8x128xf32>, vector<8x128xf32>, vector<8x128xf32> -> vector<32x128xf32>
    %c2 = arith.constant 2 : index
    %c0_20 = arith.constant 0 : index
    %c0_21 = arith.constant 0 : index
    %44 = vector.load %arg4[%c2, %c0_20, %c0_21] : memref<6x32x1xf32, #tpu.memory_space<vmem>>, vector<1x32x1xf32>
    %45 = vector.shape_cast %44 : vector<1x32x1xf32> to vector<32x1xf32>
    %46 = vector.broadcast %45 : vector<32x1xf32> to vector<32x128xf32>
    %47 = arith.addf %43, %46 : vector<32x128xf32>
    %c0_22 = arith.constant 0 : index
    %c0_23 = arith.constant 0 : index
    %c0_24 = arith.constant 0 : index
    %48 = vector.load %arg5[%c0_22, %c0_23, %c0_24] : memref<3x1x128xf32, #tpu.memory_space<vmem>>, vector<1x1x128xf32>
    %49 = vector.shape_cast %48 : vector<1x1x128xf32> to vector<1x128xf32>
    %50 = vector.broadcast %49 : vector<1x128xf32> to vector<32x128xf32>
    %51 = arith.mulf %47, %50 : vector<32x128xf32>
    %c1_25 = arith.constant 1 : index
    %c0_26 = arith.constant 0 : index
    %c0_27 = arith.constant 0 : index
    %52 = vector.load %arg5[%c1_25, %c0_26, %c0_27] : memref<3x1x128xf32, #tpu.memory_space<vmem>>, vector<1x1x128xf32>
    %53 = vector.shape_cast %52 : vector<1x1x128xf32> to vector<1x128xf32>
    %54 = vector.broadcast %53 : vector<1x128xf32> to vector<32x128xf32>
    %55 = arith.addf %51, %54 : vector<32x128xf32>
    %cst_28 = arith.constant 0.000000e+00 : f32
    %56 = vector.broadcast %cst_28 : f32 to vector<32x128xf32>
    %57 = arith.maximumf %55, %56 : vector<32x128xf32>
    %58 = arith.truncf %57 : vector<32x128xf32> to vector<32x128xbf16>
    %c0_29 = arith.constant 0 : index
    %c0_30 = arith.constant 0 : index
    %59 = vector.load %arg3[%c0_29, %c0_30] : memref<128x128xbf16, #tpu.memory_space<vmem>>, vector<128x128xbf16>
    %cst_31 = arith.constant dense<0.000000e+00> : vector<32x128xf32>
    %60 = tpu.matmul %58, %59, %cst_31 {dimension_numbers = #tpu.dot_dimension_numbers<[1], [0], [0], [1], [0, 0, 1, 1], [], []>} : vector<32x128xbf16>, vector<128x128xbf16>, vector<32x128xf32> -> vector<32x128xf32>
    %c2_32 = arith.constant 2 : index
    %c0_33 = arith.constant 0 : index
    %c0_34 = arith.constant 0 : index
    %61 = vector.load %arg5[%c2_32, %c0_33, %c0_34] : memref<3x1x128xf32, #tpu.memory_space<vmem>>, vector<1x1x128xf32>
    %62 = vector.shape_cast %61 : vector<1x1x128xf32> to vector<1x128xf32>
    %63 = vector.broadcast %62 : vector<1x128xf32> to vector<32x128xf32>
    %64 = arith.addf %60, %63 : vector<32x128xf32>
    %65 = arith.addf %47, %64 : vector<32x128xf32>
    %cst_35 = arith.constant dense<0.000000e+00> : vector<32xf32>
    %66 = vector.multi_reduction <add>, %65, %cst_35 [1] : vector<32x128xf32> to vector<32xf32>
    %67 = vector.shape_cast %66 : vector<32xf32> to vector<32x1xf32>
    %68 = arith.mulf %65, %65 : vector<32x128xf32>
    %cst_36 = arith.constant dense<0.000000e+00> : vector<32xf32>
    %69 = vector.multi_reduction <add>, %68, %cst_36 [1] : vector<32x128xf32> to vector<32xf32>
    %70 = vector.shape_cast %69 : vector<32xf32> to vector<32x1xf32>
    %cst_37 = arith.constant 7.812500e-03 : f32
    %71 = vector.broadcast %cst_37 : f32 to vector<32x1xf32>
    %72 = arith.mulf %67, %71 : vector<32x1xf32>
    %cst_38 = arith.constant 7.812500e-03 : f32
    %73 = vector.broadcast %cst_38 : f32 to vector<32x1xf32>
    %74 = arith.mulf %70, %73 : vector<32x1xf32>
    %75 = arith.mulf %72, %72 : vector<32x1xf32>
    %76 = arith.subf %74, %75 : vector<32x1xf32>
    %cst_39 = arith.constant 0.000000e+00 : f32
    %77 = vector.broadcast %cst_39 : f32 to vector<32x1xf32>
    %78 = arith.maximumf %76, %77 : vector<32x1xf32>
    %79 = vector.broadcast %72 : vector<32x1xf32> to vector<32x128xf32>
    %80 = arith.subf %65, %79 : vector<32x128xf32>
    %cst_40 = arith.constant 1.000000e-03 : f32
    %81 = vector.broadcast %cst_40 : f32 to vector<32x1xf32>
    %82 = arith.addf %78, %81 : vector<32x1xf32>
    %83 = math.rsqrt %82 : vector<32x1xf32>
    %84 = vector.broadcast %83 : vector<32x1xf32> to vector<32x128xf32>
    %85 = arith.mulf %80, %84 : vector<32x128xf32>
    %c3 = arith.constant 3 : index
    %c0_41 = arith.constant 0 : index
    %c0_42 = arith.constant 0 : index
    %86 = vector.load %arg4[%c3, %c0_41, %c0_42] : memref<6x32x1xf32, #tpu.memory_space<vmem>>, vector<1x32x1xf32>
    %87 = vector.shape_cast %86 : vector<1x32x1xf32> to vector<32x1xf32>
    %88 = vector.broadcast %87 : vector<32x1xf32> to vector<32x128xf32>
    %89 = arith.mulf %85, %88 : vector<32x128xf32>
    %c4 = arith.constant 4 : index
    %c0_43 = arith.constant 0 : index
    %c0_44 = arith.constant 0 : index
    %90 = vector.load %arg4[%c4, %c0_43, %c0_44] : memref<6x32x1xf32, #tpu.memory_space<vmem>>, vector<1x32x1xf32>
    %91 = vector.shape_cast %90 : vector<1x32x1xf32> to vector<32x1xf32>
    %92 = vector.broadcast %91 : vector<32x1xf32> to vector<32x128xf32>
    %93 = arith.addf %89, %92 : vector<32x128xf32>
    %cst_45 = arith.constant 0.000000e+00 : f32
    %94 = vector.broadcast %cst_45 : f32 to vector<32x128xf32>
    %95 = arith.maximumf %93, %94 : vector<32x128xf32>
    %c1_46 = arith.constant 1 : index
    %c0_47 = arith.constant 0 : index
    %c0_48 = arith.constant 0 : index
    %96 = vector.load %arg2[%c1_46, %c0_47, %c0_48] : memref<2x8x8xbf16, #tpu.memory_space<vmem>>, vector<1x8x8xbf16>
    %97 = vector.shape_cast %96 : vector<1x8x8xbf16> to vector<8x8xbf16>
    %98 = arith.truncf %95 : vector<32x128xf32> to vector<32x128xbf16>
    %99 = vector.extract_strided_slice %98 {offsets = [0, 0], sizes = [8, 128], strides = [1, 1]} : vector<32x128xbf16> to vector<8x128xbf16>
    %cst_49 = arith.constant dense<0.000000e+00> : vector<8x128xf32>
    %100 = tpu.matmul %97, %99, %cst_49 {dimension_numbers = #tpu.dot_dimension_numbers<[1], [0], [0], [1], [0, 0, 1, 1], [], []>} : vector<8x8xbf16>, vector<8x128xbf16>, vector<8x128xf32> -> vector<8x128xf32>
    %101 = vector.extract_strided_slice %98 {offsets = [8, 0], sizes = [8, 128], strides = [1, 1]} : vector<32x128xbf16> to vector<8x128xbf16>
    %cst_50 = arith.constant dense<0.000000e+00> : vector<8x128xf32>
    %102 = tpu.matmul %97, %101, %cst_50 {dimension_numbers = #tpu.dot_dimension_numbers<[1], [0], [0], [1], [0, 0, 1, 1], [], []>} : vector<8x8xbf16>, vector<8x128xbf16>, vector<8x128xf32> -> vector<8x128xf32>
    %103 = vector.extract_strided_slice %98 {offsets = [16, 0], sizes = [8, 128], strides = [1, 1]} : vector<32x128xbf16> to vector<8x128xbf16>
    %cst_51 = arith.constant dense<0.000000e+00> : vector<8x128xf32>
    %104 = tpu.matmul %97, %103, %cst_51 {dimension_numbers = #tpu.dot_dimension_numbers<[1], [0], [0], [1], [0, 0, 1, 1], [], []>} : vector<8x8xbf16>, vector<8x128xbf16>, vector<8x128xf32> -> vector<8x128xf32>
    %105 = vector.extract_strided_slice %98 {offsets = [24, 0], sizes = [8, 128], strides = [1, 1]} : vector<32x128xbf16> to vector<8x128xbf16>
    %cst_52 = arith.constant dense<0.000000e+00> : vector<8x128xf32>
    %106 = tpu.matmul %97, %105, %cst_52 {dimension_numbers = #tpu.dot_dimension_numbers<[1], [0], [0], [1], [0, 0, 1, 1], [], []>} : vector<8x8xbf16>, vector<8x128xbf16>, vector<8x128xf32> -> vector<8x128xf32>
    %107 = tpu.concatenate %100, %102, %104, %106 in 0 : vector<8x128xf32>, vector<8x128xf32>, vector<8x128xf32>, vector<8x128xf32> -> vector<32x128xf32>
    %c5 = arith.constant 5 : index
    %c0_53 = arith.constant 0 : index
    %c0_54 = arith.constant 0 : index
    %108 = vector.load %arg4[%c5, %c0_53, %c0_54] : memref<6x32x1xf32, #tpu.memory_space<vmem>>, vector<1x32x1xf32>
    %109 = vector.shape_cast %108 : vector<1x32x1xf32> to vector<32x1xf32>
    %110 = vector.broadcast %109 : vector<32x1xf32> to vector<32x128xf32>
    %111 = arith.addf %107, %110 : vector<32x128xf32>
    %112 = arith.addf %111, %1 : vector<32x128xf32>
    %113 = vector.shape_cast %112 : vector<32x128xf32> to vector<4x8x128xf32>
    %c0_55 = arith.constant 0 : index
    %c0_56 = arith.constant 0 : index
    %c0_57 = arith.constant 0 : index
    %114 = vector.load %arg6[%c0_55, %c0_56, %c0_57] : memref<4x8x128xf32, #tpu.memory_space<vmem>>, vector<4x8x128xf32>
    tpu.vector_store %arg6[%c0_55, %c0_56, %c0_57], %113 {strides = array<i32>} : memref<4x8x128xf32, #tpu.memory_space<vmem>>, vector<4x8x128xf32>,
    return
  }
  func.func @transform_0(%arg0: i32) -> (i32, i32, i32) {
    %c0_i32 = arith.constant 0 : i32
    %c0_i32_0 = arith.constant 0 : i32
    %c0_i32_1 = arith.constant 0 : i32
    return %arg0, %c0_i32, %c0_i32_0 : i32, i32, i32
  }
  func.func @transform_1(%arg0: i32) -> (i32, i32, i32) {
    %c0_i32 = arith.constant 0 : i32
    %c0_i32_0 = arith.constant 0 : i32
    %c0_i32_1 = arith.constant 0 : i32
    %c0_i32_2 = arith.constant 0 : i32
    return %c0_i32, %c0_i32_0, %c0_i32_1 : i32, i32, i32
  }
  func.func @transform_2(%arg0: i32) -> (i32, i32) {
    %c0_i32 = arith.constant 0 : i32
    %c0_i32_0 = arith.constant 0 : i32
    %c0_i32_1 = arith.constant 0 : i32
    return %c0_i32, %c0_i32_0 : i32, i32
  }
  func.func @transform_3(%arg0: i32) -> (i32, i32, i32) {
    %c0_i32 = arith.constant 0 : i32
    %c0_i32_0 = arith.constant 0 : i32
    %c0_i32_1 = arith.constant 0 : i32
    %c0_i32_2 = arith.constant 0 : i32
    return %c0_i32, %c0_i32_0, %c0_i32_1 : i32, i32, i32
  }
  func.func @transform_4(%arg0: i32) -> (i32, i32, i32) {
    %c0_i32 = arith.constant 0 : i32
    %c0_i32_0 = arith.constant 0 : i32
    %c0_i32_1 = arith.constant 0 : i32
    %c0_i32_2 = arith.constant 0 : i32
    return %c0_i32, %c0_i32_0, %c0_i32_1 : i32, i32, i32
  }
  func.func @transform_5(%arg0: i32) -> (i32, i32, i32) {
    %c0_i32 = arith.constant 0 : i32
    %c0_i32_0 = arith.constant 0 : i32
    %c0_i32_1 = arith.constant 0 : i32
    return %arg0, %c0_i32, %c0_i32_0 : i32, i32, i32
  }
}

</mosaic_0001>

<bundles_post_ra>
// kernel: tpu_custom_call.1
= control target key start
LH: loop header
LB: loop body
LE: loop exit
PB: predicated region body
PF: predicated region fallthrough
CT: control target
= control target key end

     0   :  { %v802_v3 = vmov 0   ;;  %s1076_s0 = inlined_call_operand.vmem [shape: f32[4,8,128], index: 0, kind: input, shape index: {}]   ;;  %s1077_s1 = inlined_call_operand.vmem [shape: bf16[2,8,8], index: 1, kind: input, shape index: {}]   ;;  %s1078_s2 = inlined_call_operand.vmem [shape: bf16[128,128], index: 2, kind: input, shape index: {}]   ;;  %s1079_s3 = inlined_call_operand.vmem [shape: f32[6,32,1], index: 3, kind: input, shape index: {}]   ;;  %s1080_s4 = inlined_call_operand.vmem [shape: f32[3,1,128], index: 4, kind: input, shape index: {}]   ;;  %s1081_s5 = inlined_call_operand.hbm [shape: f32[4,8,128], index: 5, kind: output, shape index: {}]  }
   0x1   :  { %v839_v0 = vld [vmem:[%s1076_s0 + $0x10] sm:$0xff]  ;;  %v844_v1 = vld [vmem:[%s1076_s0 + $0x8] sm:$0xff]  ;;  %v849_v2 = vld [vmem:[%s1076_s0] sm:$0xff]  ;;  %754 = vset.pattern.permute.xlu2 %v802_v3  ;;  %755 = vset.pattern.permute.xlu0 %v802_v3 }
   0x2   :  { %30 = vadd.xlane.f32.xlu2 %v839_v0  ;;  %28 = vadd.xlane.f32.xlu1 %v844_v1 }
   0x3   :  { %26 = vadd.xlane.f32.xlu0 %v849_v2  ;;  %756 = vset.pattern.permute.xlu1 %v802_v3 }
   0x4   :  { %10 = vsyncpa [#allocation3], 0  ;;  %v35_v4 = vmul.f32 %v844_v1, %v844_v1  ;;  %v859_v5 = vld [vmem:[%s1076_s0 + $0x18] sm:$0xff]  ;;  %v34_v6 = vmul.f32 %v849_v2, %v849_v2  ;;  %v36_v8 = vmul.f32 %v839_v0, %v839_v0  ;;  %v118_v9 = vld [vmem:[%s1079_s3] sm:$0xff]  ;;  %vm188_vm9 = vcmask 1043456   ;;  %s667_s22 = sshll.u32 %s1081_s5, 4  ;;  %s668_s22 = int_to_ptr.hbm [resolvable:$true] %s667_s22 }
   0x5   :  { %v37_v7 = vmul.f32 %v859_v5, %v859_v5  ;;  %v679_v10 = vld [vmem:[%s1079_s3 + $0x20] sm:$0xff]  ;;  %v680_v11 = vld [vmem:[%s1079_s3 + $0x28] sm:$0xff]  ;;  %v120_v14 = vld [vmem:[%s1079_s3 + $0x10] sm:$0xff]  ;;  %vm184_vm11 = vcmask 64512   ;;  %s804_s23 = smov 128   ;;  %s805_s24 = smov 8  }
   0x6   :  { %v119_v12 = vld [vmem:[%s1079_s3 + $0x8] sm:$0xff]  ;;  %v687_v13 = vld [vmem:[%s1079_s3 + $0x40] sm:$0xff]  ;;  %v121_v15 = vld [vmem:[%s1079_s3 + $0x18] sm:$0xff] }
   0x7   :  { %v690_v16 = vld [vmem:[%s1079_s3 + $0x58] sm:$0xff]  ;;  %v681_v17 = vld [vmem:[%s1079_s3 + $0x30] sm:$0xff]  ;;  %v729_v19 = vld [vmem:[%s1079_s3 + $0x80] sm:$0xff] }
   0x8   :  { %v682_v18 = vld [vmem:[%s1079_s3 + $0x38] sm:$0xff]  ;;  %v688_v20 = vld [vmem:[%s1079_s3 + $0x48] sm:$0xff]  ;;  %v689_v21 = vld [vmem:[%s1079_s3 + $0x50] sm:$0xff] }
   0x9   :  { %v727_v22 = vld [vmem:[%s1079_s3 + $0x70] sm:$0xff]  ;;  %v725_v23 = vld [vmem:[%s1079_s3 + $0x60] sm:$0xff]  ;;  %v726_v24 = vld [vmem:[%s1079_s3 + $0x68] sm:$0xff] }
   0xa   :  { %32 = vadd.xlane.f32.xlu2 %v859_v5  ;;  %40 = vadd.xlane.f32.xlu1 %v35_v4  ;;  %v730_v25 = vld [vmem:[%s1079_s3 + $0x88] sm:$0xff] }
   0xb   :  { %38 = vadd.xlane.f32.xlu0 %v34_v6 }
  0x12   :  { %44 = vadd.xlane.f32.xlu1 %v37_v7 }
  0x13   :  { %42 = vadd.xlane.f32.xlu0 %v36_v8 }
  0x22   :  { %124 = vperm.xlu2 %754, %v118_v9  }
  0x27   :  { %153 = vperm.xlu0 %755, %v679_v10  }
  0x2a   :  { %158 = vperm.xlu2 %754, %v680_v11  }
  0x2b   :  { %129 = vperm.xlu1 %756, %v119_v12  }
  0x2f   :  { %260 = vperm.xlu0 %755, %v687_v13  }
  0x32   :  { %134 = vperm.xlu2 %754, %v120_v14  }
  0x33   :  { %139 = vperm.xlu1 %756, %v121_v15  }
  0x37   :  { %275 = vperm.xlu0 %755, %v690_v16  }
  0x3a   :  { %163 = vperm.xlu2 %754, %v681_v17  }
  0x3b   :  { %168 = vperm.xlu1 %756, %v682_v18  }
  0x3f   :  { %525 = vperm.xlu0 %755, %v729_v19  }
  0x42   :  { %265 = vperm.xlu2 %754, %v688_v20  }
  0x43   :  { %270 = vperm.xlu1 %756, %v689_v21  }
  0x47   :  { %506 = vperm.xlu0 %755, %v727_v22  }
  0x4a   :  { %496 = vperm.xlu2 %754, %v725_v23  }
  0x4b   :  { %501 = vperm.xlu1 %756, %v726_v24  }
  0x52   :  { %530 = vperm.xlu2 %754, %v730_v25  }
  0x75   :  { %v31_v26 = vpop.xlane.xlu2 %30  ;;  %v29_v27 = vpop.xlane.xlu1 %28 }
  0x76   :  { %v27_v28 = vpop.xlane.xlu0 %26  ;;  %v919_v29 = vmul.f32 0.0078125, %v29_v27  ;;  %v925_v40 = vmul.f32 0.0078125, %v31_v26 }
  0x77   :  { %v46_v30 = vmul.f32 0.0078125, %v27_v28 }
  0x78   :  { %v55_v33 = vmul.f32 %v919_v29, %v919_v29  ;;  %v56_v46 = vmul.f32 %v925_v40, %v925_v40  ;;  %v67_v22 = vsub.f32 %v844_v1, %v919_v29  ;;  %v68_v29 = vsub.f32 %v839_v0, %v925_v40 }
  0x79   :  { %v54_v36 = vmul.f32 %v46_v30, %v46_v30  ;;  %v66_v16 = vsub.f32 %v849_v2, %v46_v30 }
  0x7d   :  { %v33_v31 = vpop.xlane.xlu2 %32  ;;  %v41_v32 = vpop.xlane.xlu1 %40 }
  0x7e   :  { %v51_v34 = vmul.f32 0.0078125, %v41_v32  ;;  %v39_v35 = vpop.xlane.xlu0 %38  ;;  %v923_v38 = vmul.f32 0.0078125, %v33_v31 }
  0x7f   :  { %v50_v37 = vmul.f32 0.0078125, %v39_v35 }
  0x80   :  { %v59_v39 = vsub.f32 %v51_v34, %v55_v33  ;;  %v57_v44 = vmul.f32 %v923_v38, %v923_v38  ;;  %v749_v33 = vld [vmem:[%s1078_s2 + $0x38] sm:$0xff] }
  0x81   :  { %v58_v41 = vsub.f32 %v50_v37, %v54_v36  ;;  %374 = vmatpush.bf16.msra.mxu0 %v749_v33 }
  0x82   :  { %v63_v42 = vmax.f32 %v59_v39, 0.0  ;;  %v748_v39 = vld [vmem:[%s1078_s2 + $0x30] sm:$0xff] }
  0x83   :  { %v62_v43 = vmax.f32 %v58_v41, 0.0 }
  0x84   :  { %v71_v45 = vadd.f32 0.001, %v63_v42 }
  0x85   :  { %v70_v47 = vadd.f32 0.001, %v62_v43  ;;  %v45_v48 = vpop.xlane.xlu1 %44  ;;  %v125_v49 = vpop.permute.xlu2 %124  ;;  %375 = vmatpush.bf16.msra.mxu0 %v748_v39 }
  0x86   :  { %760 = vrsqrt.f32 %v71_v45  ;;  %v53_v50 = vmul.f32 0.0078125, %v45_v48  ;;  %v43_v51 = vpop.xlane.xlu0 %42  ;;  %vm90_vm4 = vweird.f32 %v71_v45 }
  0x87   :  { %762 = vrsqrt.f32 %v70_v47  ;;  %v52_v52 = vmul.f32 0.0078125, %v43_v51  ;;  %vm80_vm2 = vweird.f32 %v70_v47  ;;  %v747_v51 = vld [vmem:[%s1078_s2 + $0x28] sm:$0xff] }
  0x88   :  { %v61_v53 = vsub.f32 %v53_v50, %v57_v44 }
  0x89   :  { %v60_v54 = vsub.f32 %v52_v52, %v56_v46  ;;  %376 = vmatpush.bf16.msra.mxu0 %v747_v51 }
  0x8a   :  { %v65_v55 = vmax.f32 %v61_v53, 0.0 }
  0x8b   :  { %v64_v56 = vmax.f32 %v60_v54, 0.0 }
  0x8c   :  { %v761_v57 = vpop.eup %760  ;;  %v931_v58 = vadd.f32 0.001, %v65_v55 }
  0x8d   :  { %v763_v59 = vpop.eup %762  ;;  %v85_v60 = vmul.f32 %v761_v57, %v71_v45  ;;  %v72_v61 = vadd.f32 0.001, %v64_v56  ;;  %v159_v4 = vpop.permute.xlu2 %158  ;;  %vm91_vm1 = vweird.f32 %v761_v57 }
  0x8e   :  { %v75_v62 = vmul.f32 %v763_v59, %v70_v47  ;;  %764 = vrsqrt.f32 %v931_v58  ;;  %vm81_vm0 = vweird.f32 %v763_v59  ;;  %vm92_vm5 = vmor %vm90_vm4, %vm91_vm1  ;;  %vm110_vm12 = vweird.f32 %v931_v58 }
  0x8f   :  { %v86_v63 = vmul.f32 %v761_v57, %v85_v60  ;;  %766 = vrsqrt.f32 %v72_v61  ;;  %vm82_vm3 = vmor %vm80_vm2, %vm81_vm0  ;;  %vm100_vm7 = vweird.f32 %v72_v61 }
  0x90   :  { %v76_v3 = vmul.f32 %v763_v59, %v75_v62 }
  0x91   :  { %v87_v6 = vmul.f32 0.5, %v86_v63  ;;  %v745_v63 = vld [vmem:[%s1078_s2 + $0x18] sm:$0xff] }
  0x92   :  { %v77_v7 = vmul.f32 0.5, %v76_v3 }
  0x93   :  { %v88_v8 = vsub.f32 1.5, %v87_v6 }
  0x94   :  { %v934_v9 = vpop.eup %764  ;;  %v78_v10 = vsub.f32 1.5, %v77_v7 }
  0x95   :  { %v767_v11 = vpop.eup %766  ;;  %v105_v12 = vmul.f32 %v934_v9, %v931_v58  ;;  %v89_v13 = vmul.f32 %v761_v57, %v88_v8  ;;  %v135_v23 = vpop.permute.xlu2 %134  ;;  %vm111_vm10 = vweird.f32 %v934_v9  ;;  %v744_v8 = vld [vmem:[%s1078_s2 + $0x10] sm:$0xff] }
  0x96   :  { %v79_v14 = vmul.f32 %v763_v59, %v78_v10  ;;  %v95_v15 = vmul.f32 %v767_v11, %v72_v61  ;;  %vm101_vm6 = vweird.f32 %v767_v11  ;;  %vm112_vm13 = vmor %vm110_vm12, %vm111_vm10  ;;  %v742_v10 = vld [vmem:[%s1078_s2] sm:$0xff] }
  0x97   :  { %v106_v17 = vmul.f32 %v934_v9, %v105_v12  ;;  %v93_v21 = vsel %vm92_vm5, %v761_v57, %v89_v13  ;;  %vm102_vm8 = vmor %vm100_vm7, %vm101_vm6  ;;  %v69_v57 = vsub.f32 %v859_v5, %v923_v38 }
  0x98   :  { %v83_v18 = vsel %vm82_vm3, %v763_v59, %v79_v14  ;;  %v96_v19 = vmul.f32 %v767_v11, %v95_v15  ;;  %v115_v30 = vmul.f32 %v93_v21, %v67_v22  ;;  %v746_v59 = vld [vmem:[%s1078_s2 + $0x20] sm:$0xff] }
  0x99   :  { %v114_v20 = vmul.f32 %v83_v18, %v66_v16  ;;  %v107_v26 = vmul.f32 0.5, %v106_v17  ;;  %v154_v28 = vpop.permute.xlu0 %153  ;;  %377 = vmatpush.bf16.msra.mxu0 %v746_v59  ;;  %v758_v15 = vld [vmem:[%s1080_s4 + $0x1] ss:$0 sm:$0xff] }
  0x9a   :  { %v97_v24 = vmul.f32 0.5, %v96_v19 }
  0x9b   :  { %v142_v25 = vmul.f32 %v125_v49, %v114_v20  ;;  %v108_v37 = vsub.f32 1.5, %v107_v26  ;;  %v179_v49 = vld [vmem:[%s1077_s1] sm:$0xf] }
  0x9c   :  { %v98_v27 = vsub.f32 1.5, %v97_v24 }
  0x9d   :  { %v171_v31 = vadd.f32 %v154_v28, %v142_v25  ;;  %v130_v32 = vpop.permute.xlu1 %129  ;;  %v109_v48 = vmul.f32 %v934_v9, %v108_v37  ;;  %v164_v40 = vpop.permute.xlu2 %163  ;;  %378 = vmatpush.bf16.msra.mxu0 %v745_v63  ;;  %v731_v63 = vld [vmem:[%s1079_s3 + $0x90] sm:$0xff] }
  0x9e   :  { %v99_v34 = vmul.f32 %v767_v11, %v98_v27  ;;  %v143_v35 = vmul.f32 %v130_v32, %v115_v30 }
  0x9f   :  { %v175_v36 = vmax.f32 %v171_v31, 0.0  ;;  %v113_v56 = vsel %vm112_vm13, %v934_v9, %v109_v48  ;;  %v743_v9 = vld [vmem:[%s1078_s2 + $0x8] sm:$0xff] }
  0xa0   :  { %v103_v41 = vsel %vm102_vm8, %v767_v11, %v99_v34  ;;  %v172_v42 = vadd.f32 %v159_v4, %v143_v35  ;;  %v117_v58 = vmul.f32 %v113_v56, %v69_v57  ;;  %v757_v11 = vld [vmem:[%s1080_s4] ss:$0 sm:$0xff] }
  0xa1   :  { %v116_v43 = vmul.f32 %v103_v41, %v68_v29  ;;  %v180_v44 = vpack.c.bf16 %v175_v36, %v175_v36  ;;  %379 = vmatpush.bf16.msra.mxu0 %v744_v8  ;;  %v261_v16 = vpop.permute.xlu0 %260 }
  0xa2   :  { %v176_v45 = vmax.f32 %v172_v42, 0.0 }
  0xa3   :  { %v144_v46 = vmul.f32 %v135_v23, %v116_v43  ;;  %v190_v47 = vsel %vm188_vm9, %v180_v44, 0 }
  0xa4   :  { %199 = vmatpush.bf16.msra.mxu2 %v190_v47  ;;  %v181_v50 = vpack.c.bf16 %v176_v45, %v176_v45  ;;  %v759_v45 = vld [vmem:[%s1080_s4 + $0x2] ss:$0 sm:$0xff] }
  0xa5   :  { %v173_v52 = vadd.f32 %v164_v40, %v144_v46  ;;  %v140_v53 = vpop.permute.xlu1 %139  ;;  %380 = vmatpush.bf16.msra.mxu0 %v743_v9  ;;  %v266_v12 = vpop.permute.xlu2 %265 }
  0xa6   :  { %v206_v54 = vsel %vm188_vm9, %v181_v50, 0  ;;  %v145_v62 = vmul.f32 %v140_v53, %v117_v58 }
  0xa7   :  { %v177_v55 = vmax.f32 %v173_v52, 0.0  ;;  %683 = vmatmul.msk.bf16.vlgmr.msra.gmra.mxu2 %vm184_vm11, %v179_v49  ;;  %215 = vmatpush.bf16.msra.mxu1 %v206_v54 }
  0xa9   :  { %v182_v60 = vpack.c.bf16 %v177_v55, %v177_v55  ;;  %381 = vmatpush.bf16.msra.mxu0 %v742_v10  ;;  %v276_v31 = vpop.permute.xlu0 %275 }
  0xaa   :  { %684 = vmatmul.msk.bf16.vlgmr.msra.gmra.mxu1 %vm184_vm11, %v179_v49 }
  0xab   :  { %v222_v61 = vsel %vm188_vm9, %v182_v60, 0 }
  0xac   :  { %231 = vmatpush.bf16.msrb.mxu2 %v222_v61  ;;  %v728_v61 = vld [vmem:[%s1079_s3 + $0x78] sm:$0xff] }
  0xad   :  { %v169_v3 = vpop.permute.xlu1 %168 }
  0xae   :  { %v174_v38 = vadd.f32 %v169_v3, %v145_v62  ;;  %v732_v62 = vld [vmem:[%s1079_s3 + $0x98] sm:$0xff]  ;;  %v739_v3 = vld [vmem:[%s1079_s3 + $0xa8] sm:$0xff] }
  0xb0   :  { %v178_v4 = vmax.f32 %v174_v38, 0.0  ;;  %v740_v38 = vld [vmem:[%s1079_s3 + $0xb0] sm:$0xff] }
  0xb1   :  { %v526_v8 = vpop.permute.xlu0 %525 }
  0xb2   :  { %v183_v6 = vpack.c.bf16 %v178_v4, %v178_v4  ;;  %v738_v4 = vld [vmem:[%s1079_s3 + $0xa0] sm:$0xff] }
  0xb4   :  { %v238_v7 = vsel %vm188_vm9, %v183_v6, 0  ;;  %v741_v6 = vld [vmem:[%s1079_s3 + $0xb8] sm:$0xff] }
  0xb5   :  { %247 = vmatpush.bf16.msra.mxu3 %v238_v7  ;;  %v271_v28 = vpop.permute.xlu1 %270  ;;  %v497_v7 = vpop.permute.xlu2 %496 }
  0xb7   :  { %685 = vmatmul.msk.bf16.vlgmr.msrb.gmra.mxu2 %vm184_vm11, %v179_v49 }
  0xb8   :  { %686 = vmatmul.msk.bf16.vlgmr.msra.gmra.mxu3 %vm184_vm11, %v179_v49 }
  0xbd   :  { %v1035_v9 = vpop.permute.xlu2 %530  ;;  %v1037_v10 = vpop.permute.xlu1 %501 }
 0x127   :  { %v217_v13 = vpop.f32.mrf.mxu1 }
 0x128   :  { %v279_v14 = vadd.f32 %v266_v12, %v217_v13 }
 0x12a   :  { %v287_v17 = vmul.f32 %v757_v11, %v279_v14  ;;  %v201_v18 = vpop.f32.mrf.mxu2 }
 0x12b   :  { %v278_v19 = vadd.f32 %v261_v16, %v201_v18 }
 0x12c   :  { %v296_v21 = vadd.f32 %v758_v15, %v287_v17 }
 0x12d   :  { %v286_v20 = vmul.f32 %v757_v11, %v278_v19 }
 0x12e   :  { %v300_v25 = vmax.f32 %v296_v21, 0.0 }
 0x12f   :  { %v219_v22 = vpop.f32.mrf.mxu1  ;;  %v295_v23 = vadd.f32 %v758_v15, %v286_v20 }
 0x131   :  { %v299_v24 = vmax.f32 %v295_v23, 0.0 }
 0x132   :  { %v203_v26 = vpop.f32.mrf.mxu2 }
 0x133   :  { %v303_v27 = vpack.c.bf16 %v300_v25, %v299_v24 }
 0x135   :  { %382 = vmatmul.bf16.vlgmr.msra.gmra.mxu0 %v303_v27 }
 0x13a   :  { %v233_v30 = vpop.f32.mrf.mxu2 }
 0x13b   :  { %v280_v32 = vadd.f32 %v271_v28, %v233_v30  ;;  %v249_v33 = vpop.f32.mrf.mxu3 }
 0x13c   :  { %v281_v34 = vadd.f32 %v276_v31, %v249_v33 }
 0x13d   :  { %v288_v35 = vmul.f32 %v757_v11, %v280_v32 }
 0x13e   :  { %v289_v29 = vmul.f32 %v757_v11, %v281_v34  ;;  %v1039_v11 = vpop.permute.xlu0 %506 }
 0x13f   :  { %v297_v36 = vadd.f32 %v758_v15, %v288_v35 }
 0x140   :  { %v298_v37 = vadd.f32 %v758_v15, %v289_v29 }
 0x141   :  { %v301_v41 = vmax.f32 %v297_v36, 0.0 }
 0x142   :  { %v235_v39 = vpop.f32.mrf.mxu2  ;;  %v302_v42 = vmax.f32 %v298_v37, 0.0 }
 0x143   :  { %v251_v43 = vpop.f32.mrf.mxu3 }
 0x144   :  { %v304_v44 = vpack.c.bf16 %v302_v42, %v301_v41 }
 0x146   :  { %387 = vmatmul.bf16.gmra.mxu0 %v304_v44 }
 0x1b2   :  { %v383_v46 = vpop.f32.mrf.mxu0 }
 0x1b3   :  { %v384_v47 = vadd.f32 %v759_v45, %v383_v46 }
 0x1b5   :  { %v994_v48 = vadd.f32 %v384_v47, %v278_v19 }
 0x1b7   :  { %397 = vadd.xlane.f32.xlu2 %v994_v48  ;;  %v405_v40 = vmul.f32 %v994_v48, %v994_v48 }
 0x1b9   :  { %409 = vadd.xlane.f32.xlu1 %v405_v40 }
 0x1ba   :  { %v385_v49 = vpop.f32.mrf.mxu0 }
 0x1bb   :  { %v386_v50 = vadd.f32 %v759_v45, %v385_v49 }
 0x1bd   :  { %v999_v51 = vadd.f32 %v386_v50, %v279_v14 }
 0x1bf   :  { %399 = vadd.xlane.f32.xlu0 %v999_v51  ;;  %v406_v52 = vmul.f32 %v999_v51, %v999_v51 }
 0x1c1   :  { %411 = vadd.xlane.f32.xlu1 %v406_v52 }
 0x1c3   :  { %v388_v53 = vpop.f32.mrf.mxu0 }
 0x1c4   :  { %v389_v54 = vadd.f32 %v759_v45, %v388_v53 }
 0x1c6   :  { %v1004_v55 = vadd.f32 %v389_v54, %v280_v32 }
 0x1c8   :  { %401 = vadd.xlane.f32.xlu2 %v1004_v55  ;;  %v407_v60 = vmul.f32 %v1004_v55, %v1004_v55 }
 0x1cb   :  { %v390_v56 = vpop.f32.mrf.mxu0 }
 0x1cc   :  { %v391_v57 = vadd.f32 %v759_v45, %v390_v56 }
 0x1ce   :  { %v1007_v59 = vadd.f32 %v391_v57, %v281_v34 }
 0x1d0   :  { %403 = vadd.xlane.f32.xlu0 %v1007_v59  ;;  %413 = vadd.xlane.f32.xlu2 %v407_v60  ;;  %v408_v58 = vmul.f32 %v1007_v59, %v1007_v59 }
 0x1d2   :  { %415 = vadd.xlane.f32.xlu1 %v408_v58 }
 0x1e4   :  { %511 = vperm.xlu0 %755, %v728_v61  }
 0x1e8   :  { %540 = vperm.xlu2 %754, %v732_v62  }
 0x1eb   :  { %535 = vperm.xlu1 %756, %v731_v63  }
 0x1ec   :  { %636 = vperm.xlu0 %755, %v739_v3  }
 0x1f0   :  { %641 = vperm.xlu2 %754, %v740_v38  }
 0x1f3   :  { %631 = vperm.xlu1 %756, %v738_v4  }
 0x1fb   :  { %646 = vperm.xlu1 %756, %v741_v6  }
 0x22a   :  { %v398_v12 = vpop.xlane.xlu2 %397 }
 0x22b   :  { %v417_v13 = vmul.f32 0.0078125, %v398_v12 }
 0x22c   :  { %v410_v14 = vpop.xlane.xlu1 %409 }
 0x22d   :  { %v425_v15 = vmul.f32 %v417_v13, %v417_v13  ;;  %v421_v16 = vmul.f32 0.0078125, %v410_v14  ;;  %v437_v46 = vsub.f32 %v994_v48, %v417_v13 }
 0x22f   :  { %v429_v17 = vsub.f32 %v421_v16, %v425_v15 }
 0x231   :  { %v433_v18 = vmax.f32 %v429_v17, 0.0 }
 0x232   :  { %v400_v19 = vpop.xlane.xlu0 %399 }
 0x233   :  { %v441_v20 = vadd.f32 0.001, %v433_v18  ;;  %v418_v21 = vmul.f32 0.0078125, %v400_v19 }
 0x234   :  { %v412_v22 = vpop.xlane.xlu1 %411 }
 0x235   :  { %768 = vrsqrt.f32 %v441_v20  ;;  %v426_v23 = vmul.f32 %v418_v21, %v418_v21  ;;  %v422_v24 = vmul.f32 0.0078125, %v412_v22  ;;  %vm451_vm15 = vweird.f32 %v441_v20 }
 0x236   :  { %v438_v38 = vsub.f32 %v999_v51, %v418_v21 }
 0x237   :  { %v430_v25 = vsub.f32 %v422_v24, %v426_v23 }
 0x239   :  { %v434_v26 = vmax.f32 %v430_v25, 0.0 }
 0x23b   :  { %v769_v27 = vpop.eup %768  ;;  %v402_v28 = vpop.xlane.xlu2 %401  ;;  %v442_v31 = vadd.f32 0.001, %v434_v26 }
 0x23c   :  { %v446_v30 = vmul.f32 %v769_v27, %v441_v20  ;;  %v1041_v34 = vmul.f32 0.0078125, %v402_v28  ;;  %vm452_vm14 = vweird.f32 %v769_v27 }
 0x23d   :  { %770 = vrsqrt.f32 %v442_v31  ;;  %vm453_vm0 = vmor %vm451_vm15, %vm452_vm14  ;;  %vm461_vm2 = vweird.f32 %v442_v31 }
 0x23e   :  { %v447_v32 = vmul.f32 %v769_v27, %v446_v30  ;;  %v427_v39 = vmul.f32 %v1041_v34, %v1041_v34 }
 0x240   :  { %v448_v33 = vmul.f32 0.5, %v447_v32 }
 0x242   :  { %v449_v35 = vsub.f32 1.5, %v448_v33 }
 0x243   :  { %v414_v29 = vpop.xlane.xlu2 %413  ;;  %v404_v36 = vpop.xlane.xlu0 %403 }
 0x244   :  { %v771_v37 = vpop.eup %770  ;;  %v423_v41 = vmul.f32 0.0078125, %v414_v29  ;;  %v1045_v42 = vmul.f32 0.0078125, %v404_v36  ;;  %v450_v43 = vmul.f32 %v769_v27, %v449_v35 }
 0x245   :  { %v456_v44 = vmul.f32 %v771_v37, %v442_v31  ;;  %v416_v45 = vpop.xlane.xlu1 %415  ;;  %vm462_vm1 = vweird.f32 %v771_v37 }
 0x246   :  { %v431_v47 = vsub.f32 %v423_v41, %v427_v39  ;;  %v428_v40 = vmul.f32 %v1045_v42, %v1045_v42  ;;  %v424_v49 = vmul.f32 0.0078125, %v416_v45  ;;  %v454_v52 = vsel %vm453_vm0, %v769_v27, %v450_v43  ;;  %vm463_vm3 = vmor %vm461_vm2, %vm462_vm1 }
 0x247   :  { %v457_v50 = vmul.f32 %v771_v37, %v456_v44  ;;  %v485_v56 = vmul.f32 %v454_v52, %v437_v46  ;;  %v440_v31 = vsub.f32 %v1007_v59, %v1045_v42 }
 0x248   :  { %v435_v53 = vmax.f32 %v431_v47, 0.0  ;;  %v432_v54 = vsub.f32 %v424_v49, %v428_v40 }
 0x249   :  { %v458_v57 = vmul.f32 0.5, %v457_v50  ;;  %v514_v61 = vmul.f32 %v497_v7, %v485_v56 }
 0x24a   :  { %v443_v60 = vadd.f32 0.001, %v435_v53  ;;  %v436_v58 = vmax.f32 %v432_v54, 0.0 }
 0x24b   :  { %v459_v62 = vsub.f32 1.5, %v458_v57  ;;  %v543_v48 = vadd.f32 %v526_v8, %v514_v61  ;;  %v733_v8 = vld [vmem:[%s1077_s1 + $0x4] sm:$0xf]  ;;  %s803_s1 = smov [#allocation2]  }
 0x24c   :  { %772 = vrsqrt.f32 %v443_v60  ;;  %v444_v63 = vadd.f32 0.001, %v436_v58  ;;  %vm471_vm5 = vweird.f32 %v443_v60  ;;  %s665_s19 = sshll.u32 %s803_s1, 4  ;;  %s666_s19 = int_to_ptr.vmem [resolvable:$true] %s665_s19 }
 0x24d   :  { %v460_v3 = vmul.f32 %v771_v37, %v459_v62  ;;  %v547_v4 = vmax.f32 %v543_v48, 0.0 }
 0x24e   :  { %774 = vrsqrt.f32 %v444_v63  ;;  %vm481_vm8 = vweird.f32 %v444_v63 }
 0x24f   :  { %v464_v6 = vsel %vm463_vm3, %v771_v37, %v460_v3  ;;  %v553_v12 = vpack.c.bf16 %v547_v4, %v547_v4 }
 0x250   :  { %v486_v13 = vmul.f32 %v464_v6, %v438_v38 }
 0x251   :  { %v561_v15 = vsel %vm188_vm9, %v553_v12, 0 }
 0x252   :  { %v773_v14 = vpop.eup %772  ;;  %v515_v7 = vmul.f32 %v1037_v10, %v486_v13  ;;  %570 = vmatpush.bf16.msrb.mxu1 %v561_v15 }
 0x253   :  { %v466_v16 = vmul.f32 %v773_v14, %v443_v60  ;;  %vm472_vm4 = vweird.f32 %v773_v14 }
 0x254   :  { %v775_v17 = vpop.eup %774  ;;  %v544_v51 = vadd.f32 %v1035_v9, %v515_v7  ;;  %v439_v9 = vsub.f32 %v1004_v55, %v1041_v34  ;;  %vm473_vm7 = vmor %vm471_vm5, %vm472_vm4  ;;  %v541_v55 = vpop.permute.xlu2 %540 }
 0x255   :  { %v467_v18 = vmul.f32 %v773_v14, %v466_v16  ;;  %v476_v19 = vmul.f32 %v775_v17, %v444_v63  ;;  %734 = vmatmul.msk.bf16.vlgmr.msrb.gmra.mxu1 %vm184_vm11, %v733_v8  ;;  %vm482_vm6 = vweird.f32 %v775_v17 }
 0x256   :  { %v548_v20 = vmax.f32 %v544_v51, 0.0  ;;  %vm483_vm10 = vmor %vm481_vm8, %vm482_vm6  ;;  %v512_v36 = vpop.permute.xlu0 %511 }
 0x257   :  { %v468_v21 = vmul.f32 0.5, %v467_v18  ;;  %v477_v22 = vmul.f32 %v775_v17, %v476_v19 }
 0x258   :  { %v554_v23 = vpack.c.bf16 %v548_v20, %v548_v20 }
 0x259   :  { %v469_v24 = vsub.f32 1.5, %v468_v21  ;;  %v478_v25 = vmul.f32 0.5, %v477_v22 }
 0x25a   :  { %v577_v10 = vsel %vm188_vm9, %v554_v23, 0 }
 0x25b   :  { %v479_v26 = vsub.f32 1.5, %v478_v25  ;;  %586 = vmatpush.bf16.msra.mxu2 %v577_v10  ;;  %v470_v27 = vmul.f32 %v773_v14, %v469_v24 }
 0x25d   :  { %v480_v28 = vmul.f32 %v775_v17, %v479_v26  ;;  %v474_v30 = vsel %vm473_vm7, %v773_v14, %v470_v27  ;;  %v536_v37 = vpop.permute.xlu1 %535 }
 0x25e   :  { %735 = vmatmul.msk.bf16.vlgmr.msra.gmra.mxu2 %vm184_vm11, %v733_v8  ;;  %v487_v32 = vmul.f32 %v474_v30, %v439_v9  ;;  %v637_v52 = vpop.permute.xlu0 %636 }
 0x25f   :  { %v484_v33 = vsel %vm483_vm10, %v775_v17, %v480_v28 }
 0x260   :  { %v488_v35 = vmul.f32 %v484_v33, %v440_v31  ;;  %v516_v29 = vmul.f32 %v1039_v11, %v487_v32 }
 0x262   :  { %v517_v39 = vmul.f32 %v512_v36, %v488_v35  ;;  %v545_v41 = vadd.f32 %v536_v37, %v516_v29 }
 0x264   :  { %v546_v34 = vadd.f32 %v541_v55, %v517_v39  ;;  %v549_v43 = vmax.f32 %v545_v41, 0.0 }
 0x265   :  { %v632_v11 = vpop.permute.xlu1 %631 }
 0x266   :  { %v550_v44 = vmax.f32 %v546_v34, 0.0  ;;  %v555_v45 = vpack.c.bf16 %v549_v43, %v549_v43 }
 0x268   :  { %v556_v46 = vpack.c.bf16 %v550_v44, %v550_v44  ;;  %v593_v59 = vsel %vm188_vm9, %v555_v45, 0 }
 0x269   :  { %602 = vmatpush.bf16.msrb.mxu3 %v593_v59 }
 0x26a   :  { %v609_v42 = vsel %vm188_vm9, %v556_v46, 0 }
 0x26b   :  { %618 = vmatpush.bf16.msra.mxu1 %v609_v42 }
 0x26c   :  { %736 = vmatmul.msk.bf16.vlgmr.msrb.gmra.mxu3 %vm184_vm11, %v733_v8 }
 0x26d   :  { %v647_v60 = vpop.permute.xlu1 %646 }
 0x26e   :  { %737 = vmatmul.msk.bf16.vlgmr.msra.gmra.mxu1 %vm184_vm11, %v733_v8 }
 0x2d2   :  { %v572_v47 = vpop.f32.mrf.mxu1 }
 0x2d3   :  { %v649_v40 = vadd.f32 %v632_v11, %v572_v47 }
 0x2d5   :  { %v653_v49 = vadd.f32 %v649_v40, %v849_v2  ;;  %v642_v2 = vpop.permute.xlu2 %641 }
 0x2d7   :  { %657 = vst [vmem:[#allocation2] sm:$0xff] %v653_v49 }
 0x2da   :  { %v574_v50 = vpop.f32.mrf.mxu1 }
 0x2e1   :  { %v588_v53 = vpop.f32.mrf.mxu2 }
 0x2e2   :  { %v650_v54 = vadd.f32 %v637_v52, %v588_v53 }
 0x2e4   :  { %v654_v56 = vadd.f32 %v650_v54, %v844_v1 }
 0x2e6   :  { %658 = vst [vmem:[#allocation2 + $0x8] sm:$0xff] %v654_v56 }
 0x2e9   :  { %v590_v57 = vpop.f32.mrf.mxu2 }
 0x2eb   :  { %v620_v58 = vpop.f32.mrf.mxu1 }
 0x2ec   :  { %v652_v61 = vadd.f32 %v647_v60, %v620_v58 }
 0x2ee   :  { %v656_v62 = vadd.f32 %v652_v61, %v859_v5 }
 0x2ef   :  { %v604_v63 = vpop.f32.mrf.mxu3 }
 0x2f0   :  { %660 = vst [vmem:[#allocation2 + $0x18] sm:$0xff] %v656_v62  ;;  %v651_v48 = vadd.f32 %v642_v2, %v604_v63 }
 0x2f2   :  { %v655_v1 = vadd.f32 %v651_v48, %v839_v0 }
 0x2f3   :  { %v622_v3 = vpop.f32.mrf.mxu1 }
 0x2f4   :  { %659 = vst [vmem:[#allocation2 + $0x10] sm:$0xff] %v655_v1 }
 0x2f5   :  { %673 = dma.vmem_to_hbm [thread:$0]  %s666_s19, 512, %s668_s22, [#allocation3], %s804_s23, %s804_s23, %s805_s24  }
 0x2f7   :  { %v606_v5 = vpop.f32.mrf.mxu3 }
 0x2f8   :  { %800 = dma.done.wait [#allocation3], 512  }
 0x2f9   :  { %801 = vsyncadd [#allocation3], 4294966784 }
 0x2fa   :  { %678 = vsyncpa [#allocation3], 1 }

</bundles_post_ra>
